<compile_context>
chip_gen: v7x
topology: tpu7x:2x2x1
jax: 0.10.0
libtpu: 0.0.40
codegen_flags: <defaults>
</compile_context>

<pallas_src>
import functools

import jax
import jax.numpy as jnp
from jax.experimental import pallas as pl
from jax.experimental.pallas import tpu as pltpu

_LANE = 128
_SUBLANE = 8
_MIB = 1024 * 1024


def _cdiv(a, b):
    return -(-a // b)


def _round_up(n, m):
    return _cdiv(n, m) * m


def _pad_axis(a, axis, mult):
    pad = (-a.shape[axis]) % mult
    if pad == 0:
        return a
    widths = [(0, 0)] * a.ndim
    widths[axis] = (0, pad)
    return jnp.pad(a, widths)


def _tpu_vmem_capacity_bytes():
    try:
        info = pltpu.get_tpu_info()
        cap = int(getattr(info, "vmem_capacity_bytes", 0))
        if cap > 0:
            return cap
    except Exception:
        pass
    return 64 * _MIB  # conservative (v7x per-TensorCore VMEM)


# ----------------------------------------------------------------------------
# Kernels
# ----------------------------------------------------------------------------
def _layer_norm(y, gamma, beta, eps, d_feat):
    """Single-pass LayerNorm over the last dim; divides by the TRUE feature count
    (padded feature columns are exactly zero everywhere so sums are unaffected)."""
    inv_n = jnp.float32(1.0 / d_feat)
    mean = jnp.sum(y, axis=-1, keepdims=True) * inv_n
    var = jnp.sum(y * y, axis=-1, keepdims=True) * inv_n - mean * mean
    var = jnp.maximum(var, 0.0)  # guard E[y^2]-mean^2 cancellation -> NaN in rsqrt
    return (y - mean) * jax.lax.rsqrt(var + eps) * gamma + beta


def _ffn_ln_kernel_resident(x_ref, w1_ref, b1_ref, w2_ref, b2_ref,
                            gamma_ref, beta_ref, o_ref, *, eps, d_feat):
    """Fully-resident-weights path: one (tm, d_in_p) row tile per grid step."""
    x = x_ref[...]
    h = jnp.dot(x, w1_ref[...], preferred_element_type=jnp.float32)
    h = jnp.maximum(h + b1_ref[...], 0.0)
    y = jnp.dot(h.astype(w2_ref.dtype), w2_ref[...],
                preferred_element_type=jnp.float32)
    y = y + b2_ref[...] + x.astype(jnp.float32)
    o_ref[...] = _layer_norm(y, gamma_ref[...], beta_ref[...],
                             eps, d_feat).astype(o_ref.dtype)


def _ffn_ln_kernel_ktiled(x_ref, w1_ref, b1_ref, w2_ref, b2_ref,
                          gamma_ref, beta_ref, o_ref, acc_ref, *, eps, d_feat):
    """d_hid-tiled path for FFNs whose weights do not fit the VMEM budget."""
    k = pl.program_id(1)

    @pl.when(k == 0)
    def _():
        acc_ref[...] = jnp.zeros_like(acc_ref)

    x = x_ref[...]
    h = jnp.dot(x, w1_ref[...], preferred_element_type=jnp.float32)
    h = jnp.maximum(h + b1_ref[...], 0.0)
    acc_ref[...] += jnp.dot(h.astype(w2_ref.dtype), w2_ref[...],
                            preferred_element_type=jnp.float32)

    @pl.when(k == pl.num_programs(1) - 1)
    def _():
        y = acc_ref[...] + b2_ref[...] + x.astype(jnp.float32)
        o_ref[...] = _layer_norm(y, gamma_ref[...], beta_ref[...],
                                 eps, d_feat).astype(o_ref.dtype)


# ----------------------------------------------------------------------------
# Parameter preparation (hoisted off the hot path)
# ----------------------------------------------------------------------------
def prepare_ffn_params(w1, b1, w2, b2, gamma, beta, *, mxu_dtype=jnp.bfloat16):
    """Pad features to lane width and (optionally) downcast matmul operands once.

    W1/W2 go to `mxu_dtype` (bf16 fast path on all TPU generations); biases and
    LayerNorm affine stay f32 since they only touch the f32 epilogue.
    """
    d_in, d_hid = w1.shape
    w_dtype = jnp.dtype(w1.dtype) if mxu_dtype is None else jnp.dtype(mxu_dtype)
    return dict(
        w1=_pad_axis(_pad_axis(w1.astype(w_dtype), 0, _LANE), 1, _LANE),
        w2=_pad_axis(_pad_axis(w2.astype(w_dtype), 0, _LANE), 1, _LANE),
        b1=_pad_axis(b1.reshape(1, d_hid).astype(jnp.float32), 1, _LANE),
        b2=_pad_axis(b2.reshape(1, d_in).astype(jnp.float32), 1, _LANE),
        gamma=_pad_axis(gamma.reshape(1, d_in).astype(jnp.float32), 1, _LANE),
        beta=_pad_axis(beta.reshape(1, d_in).astype(jnp.float32), 1, _LANE),
        d_in=d_in, d_hid=d_hid, mxu_dtype=w_dtype,
    )


# ----------------------------------------------------------------------------
# Tiling selection under a VMEM budget
# ----------------------------------------------------------------------------
def _select_tiling(rows, d_in_p, d_hid_p, x_bytes, w_bytes, tile_rows,
                   vmem_budget, min_row_tiles):
    rows8 = _round_up(max(rows, 1), _SUBLANE)

    def vmem_estimate(tm, tk, resident):
        wbuf = 1 if resident else 2                       # Buffered(1) vs streamed
        b = 2 * 2 * tm * d_in_p * max(x_bytes, 4) // 1    # x & out tiles, dbl-buffered
        b += wbuf * 2 * d_in_p * tk * w_bytes             # W1 + W2
        b += wbuf * _SUBLANE * tk * 4                     # b1 (f32, sublane-padded)
        b += 3 * _SUBLANE * d_in_p * 4                    # b2, gamma, beta
        b += tm * tk * 4                                  # h (f32)
        b += 2 * tm * d_in_p * 4                          # y / LN temporaries (f32)
        if not resident:
            b += tm * d_in_p * 4                          # accumulator scratch
        return b

    # Adaptive starting row tile: ragged tail waste stays small, and at least
    # `min_row_tiles` grid steps so both v7x TensorCores get work.
    n_tiles = max(_cdiv(rows8, tile_rows), min_row_tiles)
    n_tiles = max(1, min(n_tiles, rows8 // _SUBLANE))
    tm0 = _round_up(_cdiv(rows8, n_tiles), _SUBLANE)

    tm_candidates, t = [], tm0
    while t >= _SUBLANE:
        t8 = _round_up(t, _SUBLANE)
        if t8 not in tm_candidates:
            tm_candidates.append(t8)
        t //= 2

    # Phase 1: fully resident weights (W1/W2 read from HBM exactly once).
    for tm in tm_candidates:
        if vmem_estimate(tm, d_hid_p, True) <= vmem_budget:
            return tm, d_hid_p
    # Phase 2: tile d_hid (weights streamed per row tile, f32 accumulator).
    for tm in tm_candidates:
        kt = 2
        while True:
            tk = _round_up(_cdiv(d_hid_p, kt), _LANE)
            if vmem_estimate(tm, tk, False) <= vmem_budget:
                return tm, tk
            if tk <= _LANE:
                break
            kt *= 2
    return tm_candidates[-1], _LANE


# ----------------------------------------------------------------------------
# Wrapper
# ----------------------------------------------------------------------------
def ffn_apply(x, params, *, eps=1e-5, tile_rows=1024, force_hidden_tile=None):
    """x: (B, L, d_in). `params` comes from prepare_ffn_params (padded once)."""
    B, L, d_in = x.shape
    if d_in != params["d_in"]:
        raise ValueError("d_in mismatch between x and prepared params")
    mxu_dtype = params["mxu_dtype"]
    rows = B * L

    w1p, w2p = params["w1"], params["w2"]
    b1p, b2p = params["b1"], params["b2"]
    gp, btp = params["gamma"], params["beta"]
    d_in_p, d_hid_p = w1p.shape

    w_bytes = jnp.dtype(mxu_dtype).itemsize
    x_bytes = w_bytes  # x tile is cast to the MXU dtype

    vmem_capacity = _tpu_vmem_capacity_bytes()
    vmem_budget = int(vmem_capacity * 0.85)              # ~15% compiler-scratch headroom
    # Heuristic: <=96 MiB VMEM => v7x-class part (2 TensorCores) -> want >=2 row
    # tiles so dimension_semantics=("parallel",...) can shard across cores.
    min_row_tiles = 2 if vmem_capacity <= 96 * _MIB else 1

    tm, tk = _select_tiling(rows, d_in_p, d_hid_p, x_bytes, w_bytes,
                            tile_rows, vmem_budget, min_row_tiles)
    if force_hidden_tile is not None:                    # test hook for the tiled path
        tk = min(_round_up(force_hidden_tile, _LANE), d_hid_p)
    resident = tk == d_hid_p

    if not resident and d_hid_p % tk:
        # Extra zero-padding of d_hid keeps the math exact (relu(0)=0, zero W2 rows).
        w1p = _pad_axis(w1p, 1, tk)
        b1p = _pad_axis(b1p, 1, tk)
        w2p = _pad_axis(w2p, 0, tk)
        d_hid_p = w1p.shape[1]
    k_tiles = d_hid_p // tk

    x2d = _pad_axis(x.reshape(rows, d_in).astype(mxu_dtype), 1, _LANE)
    x2d = _pad_axis(x2d, 0, tm)
    rows_p = x2d.shape[0]
    n_row_tiles = rows_p // tm

    out_bytes = jnp.dtype(x.dtype).itemsize
    weight_reads = 1 if resident else n_row_tiles
    cost = pl.CostEstimate(
        flops=2 * 2 * rows_p * d_in_p * d_hid_p,
        transcendentals=rows_p,
        bytes_accessed=int(
            weight_reads * (w1p.size + w2p.size) * w_bytes
            + (b1p.size + b2p.size + gp.size + btp.size) * 4
            + rows_p * d_in_p * (x_bytes + out_bytes)),
    )
    vmem_limit = int(vmem_capacity * 0.9)

    def run(single_buffer_resident):
        def const_spec(shape, index_map):
            if single_buffer_resident:
                return pl.BlockSpec(shape, index_map, pipeline_mode=pl.Buffered(1))
            return pl.BlockSpec(shape, index_map)

        if resident:
            kernel = functools.partial(_ffn_ln_kernel_resident, eps=eps, d_feat=d_in)
            grid = (n_row_tiles,)
            zero = lambda i: (0, 0)
            in_specs = [
                pl.BlockSpec((tm, d_in_p), lambda i: (i, 0)),        # x tile
                const_spec((d_in_p, d_hid_p), zero),                 # W1 (resident)
                const_spec((1, d_hid_p), zero),                      # b1
                const_spec((d_hid_p, d_in_p), zero),                 # W2 (resident)
                const_spec((1, d_in_p), zero),                       # b2
                const_spec((1, d_in_p), zero),                       # gamma
                const_spec((1, d_in_p), zero),                       # beta
            ]
            out_specs = pl.BlockSpec((tm, d_in_p), lambda i: (i, 0))
            scratch_shapes = []
            dim_sem = ("parallel",)
        else:
            kernel = functools.partial(_ffn_ln_kernel_ktiled, eps=eps, d_feat=d_in)
            grid = (n_row_tiles, k_tiles)
            zero2 = lambda i, k: (0, 0)
            in_specs = [
                pl.BlockSpec((tm, d_in_p), lambda i, k: (i, 0)),     # x (stays put over k)
                pl.BlockSpec((d_in_p, tk), lambda i, k: (0, k)),     # W1 chunk
                pl.BlockSpec((1, tk), lambda i, k: (0, k)),          # b1 chunk
                pl.BlockSpec((tk, d_in_p), lambda i, k: (k, 0)),     # W2 chunk
                const_spec((1, d_in_p), zero2),                      # b2
                const_spec((1, d_in_p), zero2),                      # gamma
                const_spec((1, d_in_p), zero2),                      # beta
            ]
            out_specs = pl.BlockSpec((tm, d_in_p), lambda i, k: (i, 0))
            scratch_shapes = [pltpu.VMEM((tm, d_in_p), jnp.float32)]
            dim_sem = ("parallel", "arbitrary")

        return pl.pallas_call(
            kernel,
            out_shape=jax.ShapeDtypeStruct((rows_p, d_in_p), x.dtype),
            grid_spec=pltpu.PrefetchScalarGridSpec(
                num_scalar_prefetch=0,
                grid=grid,
                in_specs=in_specs,
                out_specs=out_specs,
                scratch_shapes=scratch_shapes),
            compiler_params=pltpu.CompilerParams(
                dimension_semantics=dim_sem,
                vmem_limit_bytes=vmem_limit),
            cost_estimate=cost,
        )(x2d, w1p, b1p, w2p, b2p, gp, btp)

    try:
        out2d = run(True)
    except Exception:
        # TODO(synk): pipeline_mode=pl.Buffered(1) rejected by this jax version;
        # fall back to default double-buffered resident operands.
        out2d = run(False)

    return out2d[:rows, :d_in].reshape(B, L, d_in)


def positionwise_feed_forward(x, w1, b1, w2, b2, gamma, beta, *, eps=1e-5,
                              tile_rows=1024, mxu_dtype=jnp.bfloat16):
    """Convenience wrapper; for repeated calls, hoist prepare_ffn_params out."""
    params = prepare_ffn_params(w1, b1, w2, b2, gamma, beta, mxu_dtype=mxu_dtype)
    return ffn_apply(x, params, eps=eps, tile_rows=tile_rows)


# ----------------------------------------------------------------------------
# Reference + self-test
# ----------------------------------------------------------------------------
def _reference(x, w1, b1, w2, b2, gamma, beta, eps=1e-5):
    h = jnp.maximum(x @ w1 + b1, 0.0)
    y = h @ w2 + b2 + x
    mean = jnp.mean(y, axis=-1, keepdims=True)
    var = jnp.mean((y - mean) ** 2, axis=-1, keepdims=True)
    return (y - mean) / jnp.sqrt(var + eps) * gamma + beta


def _make_params(key, d_in, d_hid):
    k1, k2, k3, k4 = jax.random.split(key, 4)
    bound1 = 1.0 / (d_in ** 0.5)
    bound2 = 1.0 / (d_hid ** 0.5)
    w1 = jax.random.uniform(k1, (d_in, d_hid), minval=-bound1, maxval=bound1)
    b1 = jax.random.uniform(k2, (d_hid,), minval=-bound1, maxval=bound1)
    w2 = jax.random.uniform(k3, (d_hid, d_in), minval=-bound2, maxval=bound2)
    b2 = jax.random.uniform(k4, (d_in,), minval=-bound2, maxval=bound2)
    gamma = jnp.ones((d_in,), dtype=jnp.float32)
    beta = jnp.zeros((d_in,), dtype=jnp.float32)
    return w1, b1, w2, b2, gamma, beta


if __name__ == "__main__":
    key = jax.random.PRNGKey(0)

    # Case 1: lane-aligned shapes, default bf16 MXU fast path.
    B, L, d_in, d_hid = 2, 8, 128, 256
    kx, kp = jax.random.split(key)
    x = jax.random.normal(kx, (B, L, d_in), dtype=jnp.float32)
    params = _make_params(kp, d_in, d_hid)
    out = jax.block_until_ready(positionwise_feed_forward(x, *params))
    ref = _reference(x, *params)
    assert out.shape == (B, L, d_in)
    assert jnp.allclose(out, ref, atol=5e-2, rtol=5e-2), "mismatch (bf16 fast path)"

    # Case 2: ragged shapes (row + feature padding), exact f32 path.
    B2, L2, d_in2, d_hid2 = 2, 5, 32, 72
    kx2, kp2 = jax.random.split(kp)
    x2 = jax.random.normal(kx2, (B2, L2, d_in2), dtype=jnp.float32)
    params2 = _make_params(kp2, d_in2, d_hid2)
    out2 = jax.block_until_ready(
        positionwise_feed_forward(x2, *params2, mxu_dtype=None))
    ref2 = _reference(x2, *params2)
    assert out2.shape == (B2, L2, d_in2)
    assert jnp.allclose(out2, ref2, atol=2e-3, rtol=2e-3), "mismatch (f32 ragged)"

    # Case 3: force the d_hid-tiled accumulator path (big-weight fallback), f32.
    prep3 = prepare_ffn_params(*params, mxu_dtype=None)
    out3 = jax.block_until_ready(ffn_apply(x, prep3, force_hidden_tile=128))
    assert jnp.allclose(out3, ref, atol=2e-3, rtol=2e-3), "mismatch (d_hid-tiled)"

    # TODO(synk): dropout is inference-mode identity; training-mode stochastic
    # dropout would use pltpu.prng_seed/prng_random_bits inside the kernel.
    print("KERNEL_OK")
</pallas_src>

<mosaic_0001>
module attributes {stable_mosaic.version = 11 : i64} {
  func.func @_ffn_ln_kernel_resident(%arg0: i32, %arg1: memref<8x128xbf16, #tpu.memory_space<vmem>>, %arg2: memref<128x256xbf16, #tpu.memory_space<vmem>>, %arg3: memref<1x256xf32, #tpu.memory_space<vmem>>, %arg4: memref<256x128xbf16, #tpu.memory_space<vmem>>, %arg5: memref<1x128xf32, #tpu.memory_space<vmem>>, %arg6: memref<1x128xf32, #tpu.memory_space<vmem>>, %arg7: memref<1x128xf32, #tpu.memory_space<vmem>>, %arg8: memref<8x128xf32, #tpu.memory_space<vmem>>) attributes {dimension_semantics = [#tpu.dimension_semantics<parallel>], iteration_bounds = array<i64: 2>, scalar_prefetch = 0 : i64, scratch_operands = 0 : i64, tpu.core_type = #tpu.core_type<tc>, window_params = [{transform_indices = @transform_0, window_bounds = array<i64: 8, 128>}, {pipeline_mode = #tpu.pipeline_mode<synchronous>, transform_indices = @transform_1, window_bounds = array<i64: 128, 256>}, {pipeline_mode = #tpu.pipeline_mode<synchronous>, transform_indices = @transform_2, window_bounds = array<i64: 1, 256>}, {pipeline_mode = #tpu.pipeline_mode<synchronous>, transform_indices = @transform_3, window_bounds = array<i64: 256, 128>}, {pipeline_mode = #tpu.pipeline_mode<synchronous>, transform_indices = @transform_4, window_bounds = array<i64: 1, 128>}, {pipeline_mode = #tpu.pipeline_mode<synchronous>, transform_indices = @transform_5, window_bounds = array<i64: 1, 128>}, {pipeline_mode = #tpu.pipeline_mode<synchronous>, transform_indices = @transform_6, window_bounds = array<i64: 1, 128>}, {transform_indices = @transform_7, window_bounds = array<i64: 8, 128>}]} {
    %c0 = arith.constant 0 : index
    %c0_0 = arith.constant 0 : index
    %0 = vector.load %arg1[%c0, %c0_0] : memref<8x128xbf16, #tpu.memory_space<vmem>>, vector<8x128xbf16>
    %c0_1 = arith.constant 0 : index
    %c0_2 = arith.constant 0 : index
    %1 = vector.load %arg2[%c0_1, %c0_2] : memref<128x256xbf16, #tpu.memory_space<vmem>>, vector<128x256xbf16>
    %cst = arith.constant dense<0.000000e+00> : vector<8x256xf32>
    %2 = tpu.matmul %0, %1, %cst {dimension_numbers = #tpu.dot_dimension_numbers<[1], [0], [0], [1], [0, 0, 1, 1], [], []>} : vector<8x128xbf16>, vector<128x256xbf16>, vector<8x256xf32> -> vector<8x256xf32>
    %c0_3 = arith.constant 0 : index
    %c0_4 = arith.constant 0 : index
    %3 = vector.load %arg3[%c0_3, %c0_4] : memref<1x256xf32, #tpu.memory_space<vmem>>, vector<1x256xf32>
    %4 = vector.broadcast %3 : vector<1x256xf32> to vector<8x256xf32>
    %5 = arith.addf %2, %4 : vector<8x256xf32>
    %cst_5 = arith.constant 0.000000e+00 : f32
    %6 = vector.broadcast %cst_5 : f32 to vector<8x256xf32>
    %7 = arith.maximumf %5, %6 : vector<8x256xf32>
    %8 = arith.truncf %7 : vector<8x256xf32> to vector<8x256xbf16>
    %c0_6 = arith.constant 0 : index
    %c0_7 = arith.constant 0 : index
    %9 = vector.load %arg4[%c0_6, %c0_7] : memref<256x128xbf16, #tpu.memory_space<vmem>>, vector<256x128xbf16>
    %cst_8 = arith.constant dense<0.000000e+00> : vector<8x128xf32>
    %10 = tpu.matmul %8, %9, %cst_8 {dimension_numbers = #tpu.dot_dimension_numbers<[1], [0], [0], [1], [0, 0, 1, 1], [], []>} : vector<8x256xbf16>, vector<256x128xbf16>, vector<8x128xf32> -> vector<8x128xf32>
    %c0_9 = arith.constant 0 : index
    %c0_10 = arith.constant 0 : index
    %11 = vector.load %arg5[%c0_9, %c0_10] : memref<1x128xf32, #tpu.memory_space<vmem>>, vector<1x128xf32>
    %12 = vector.broadcast %11 : vector<1x128xf32> to vector<8x128xf32>
    %13 = arith.addf %10, %12 : vector<8x128xf32>
    %14 = arith.extf %0 : vector<8x128xbf16> to vector<8x128xf32>
    %15 = arith.addf %13, %14 : vector<8x128xf32>
    %c0_11 = arith.constant 0 : index
    %c0_12 = arith.constant 0 : index
    %16 = vector.load %arg6[%c0_11, %c0_12] : memref<1x128xf32, #tpu.memory_space<vmem>>, vector<1x128xf32>
    %c0_13 = arith.constant 0 : index
    %c0_14 = arith.constant 0 : index
    %17 = vector.load %arg7[%c0_13, %c0_14] : memref<1x128xf32, #tpu.memory_space<vmem>>, vector<1x128xf32>
    %cst_15 = arith.constant dense<0.000000e+00> : vector<8xf32>
    %18 = vector.multi_reduction <add>, %15, %cst_15 [1] : vector<8x128xf32> to vector<8xf32>
    %19 = vector.shape_cast %18 : vector<8xf32> to vector<8x1xf32>
    %cst_16 = arith.constant 7.812500e-03 : f32
    %20 = vector.broadcast %cst_16 : f32 to vector<8x1xf32>
    %21 = arith.mulf %19, %20 : vector<8x1xf32>
    %22 = arith.mulf %15, %15 : vector<8x128xf32>
    %cst_17 = arith.constant dense<0.000000e+00> : vector<8xf32>
    %23 = vector.multi_reduction <add>, %22, %cst_17 [1] : vector<8x128xf32> to vector<8xf32>
    %24 = vector.shape_cast %23 : vector<8xf32> to vector<8x1xf32>
    %cst_18 = arith.constant 7.812500e-03 : f32
    %25 = vector.broadcast %cst_18 : f32 to vector<8x1xf32>
    %26 = arith.mulf %24, %25 : vector<8x1xf32>
    %27 = arith.mulf %21, %21 : vector<8x1xf32>
    %28 = arith.subf %26, %27 : vector<8x1xf32>
    %cst_19 = arith.constant 0.000000e+00 : f32
    %29 = vector.broadcast %cst_19 : f32 to vector<8x1xf32>
    %30 = arith.maximumf %28, %29 : vector<8x1xf32>
    %31 = vector.broadcast %21 : vector<8x1xf32> to vector<8x128xf32>
    %32 = arith.subf %15, %31 : vector<8x128xf32>
    %cst_20 = arith.constant 9.99999974E-6 : f32
    %33 = vector.broadcast %cst_20 : f32 to vector<8x1xf32>
    %34 = arith.addf %30, %33 : vector<8x1xf32>
    %35 = math.rsqrt %34 : vector<8x1xf32>
    %36 = vector.broadcast %35 : vector<8x1xf32> to vector<8x128xf32>
    %37 = arith.mulf %32, %36 : vector<8x128xf32>
    %38 = vector.broadcast %16 : vector<1x128xf32> to vector<8x128xf32>
    %39 = arith.mulf %37, %38 : vector<8x128xf32>
    %40 = vector.broadcast %17 : vector<1x128xf32> to vector<8x128xf32>
    %41 = arith.addf %39, %40 : vector<8x128xf32>
    %c0_21 = arith.constant 0 : index
    %c0_22 = arith.constant 0 : index
    %42 = vector.load %arg8[%c0_21, %c0_22] : memref<8x128xf32, #tpu.memory_space<vmem>>, vector<8x128xf32>
    tpu.vector_store %arg8[%c0_21, %c0_22], %41 {strides = array<i32>} : memref<8x128xf32, #tpu.memory_space<vmem>>, vector<8x128xf32>,
    return
  }
  func.func @transform_0(%arg0: i32) -> (i32, i32) {
    %c0_i32 = arith.constant 0 : i32
    %c0_i32_0 = arith.constant 0 : i32
    return %arg0, %c0_i32 : i32, i32
  }
  func.func @transform_1(%arg0: i32) -> (i32, i32) {
    %c0_i32 = arith.constant 0 : i32
    %c0_i32_0 = arith.constant 0 : i32
    %c0_i32_1 = arith.constant 0 : i32
    return %c0_i32, %c0_i32_0 : i32, i32
  }
  func.func @transform_2(%arg0: i32) -> (i32, i32) {
    %c0_i32 = arith.constant 0 : i32
    %c0_i32_0 = arith.constant 0 : i32
    %c0_i32_1 = arith.constant 0 : i32
    return %c0_i32, %c0_i32_0 : i32, i32
  }
  func.func @transform_3(%arg0: i32) -> (i32, i32) {
    %c0_i32 = arith.constant 0 : i32
    %c0_i32_0 = arith.constant 0 : i32
    %c0_i32_1 = arith.constant 0 : i32
    return %c0_i32, %c0_i32_0 : i32, i32
  }
  func.func @transform_4(%arg0: i32) -> (i32, i32) {
    %c0_i32 = arith.constant 0 : i32
    %c0_i32_0 = arith.constant 0 : i32
    %c0_i32_1 = arith.constant 0 : i32
    return %c0_i32, %c0_i32_0 : i32, i32
  }
  func.func @transform_5(%arg0: i32) -> (i32, i32) {
    %c0_i32 = arith.constant 0 : i32
    %c0_i32_0 = arith.constant 0 : i32
    %c0_i32_1 = arith.constant 0 : i32
    return %c0_i32, %c0_i32_0 : i32, i32
  }
  func.func @transform_6(%arg0: i32) -> (i32, i32) {
    %c0_i32 = arith.constant 0 : i32
    %c0_i32_0 = arith.constant 0 : i32
    %c0_i32_1 = arith.constant 0 : i32
    return %c0_i32, %c0_i32_0 : i32, i32
  }
  func.func @transform_7(%arg0: i32) -> (i32, i32) {
    %c0_i32 = arith.constant 0 : i32
    %c0_i32_0 = arith.constant 0 : i32
    return %arg0, %c0_i32 : i32, i32
  }
}

module attributes {stable_mosaic.version = 11 : i64} {
  func.func @_ffn_ln_kernel_resident(%arg0: i32, %arg1: memref<8x128xbf16, #tpu.memory_space<vmem>>, %arg2: memref<128x256xbf16, #tpu.memory_space<vmem>>, %arg3: memref<1x256xf32, #tpu.memory_space<vmem>>, %arg4: memref<256x128xbf16, #tpu.memory_space<vmem>>, %arg5: memref<1x128xf32, #tpu.memory_space<vmem>>, %arg6: memref<1x128xf32, #tpu.memory_space<vmem>>, %arg7: memref<1x128xf32, #tpu.memory_space<vmem>>, %arg8: memref<8x128xf32, #tpu.memory_space<vmem>>) attributes {dimension_semantics = [#tpu.dimension_semantics<parallel>], iteration_bounds = array<i64: 2>, scalar_prefetch = 0 : i64, scratch_operands = 0 : i64, tpu.core_type = #tpu.core_type<tc>, window_params = [{transform_indices = @transform_0, window_bounds = array<i64: 8, 128>}, {pipeline_mode = #tpu.pipeline_mode<synchronous>, transform_indices = @transform_1, window_bounds = array<i64: 128, 256>}, {pipeline_mode = #tpu.pipeline_mode<synchronous>, transform_indices = @transform_2, window_bounds = array<i64: 1, 256>}, {pipeline_mode = #tpu.pipeline_mode<synchronous>, transform_indices = @transform_3, window_bounds = array<i64: 256, 128>}, {pipeline_mode = #tpu.pipeline_mode<synchronous>, transform_indices = @transform_4, window_bounds = array<i64: 1, 128>}, {pipeline_mode = #tpu.pipeline_mode<synchronous>, transform_indices = @transform_5, window_bounds = array<i64: 1, 128>}, {pipeline_mode = #tpu.pipeline_mode<synchronous>, transform_indices = @transform_6, window_bounds = array<i64: 1, 128>}, {transform_indices = @transform_7, window_bounds = array<i64: 8, 128>}]} {
    %c0 = arith.constant 0 : index
    %c0_0 = arith.constant 0 : index
    %0 = vector.load %arg1[%c0, %c0_0] : memref<8x128xbf16, #tpu.memory_space<vmem>>, vector<8x128xbf16>
    %c0_1 = arith.constant 0 : index
    %c0_2 = arith.constant 0 : index
    %1 = vector.load %arg2[%c0_1, %c0_2] : memref<128x256xbf16, #tpu.memory_space<vmem>>, vector<128x256xbf16>
    %cst = arith.constant dense<0.000000e+00> : vector<8x256xf32>
    %2 = tpu.matmul %0, %1, %cst {dimension_numbers = #tpu.dot_dimension_numbers<[1], [0], [0], [1], [0, 0, 1, 1], [], []>} : vector<8x128xbf16>, vector<128x256xbf16>, vector<8x256xf32> -> vector<8x256xf32>
    %c0_3 = arith.constant 0 : index
    %c0_4 = arith.constant 0 : index
    %3 = vector.load %arg3[%c0_3, %c0_4] : memref<1x256xf32, #tpu.memory_space<vmem>>, vector<1x256xf32>
    %4 = vector.broadcast %3 : vector<1x256xf32> to vector<8x256xf32>
    %5 = arith.addf %2, %4 : vector<8x256xf32>
    %cst_5 = arith.constant 0.000000e+00 : f32
    %6 = vector.broadcast %cst_5 : f32 to vector<8x256xf32>
    %7 = arith.maximumf %5, %6 : vector<8x256xf32>
    %8 = arith.truncf %7 : vector<8x256xf32> to vector<8x256xbf16>
    %c0_6 = arith.constant 0 : index
    %c0_7 = arith.constant 0 : index
    %9 = vector.load %arg4[%c0_6, %c0_7] : memref<256x128xbf16, #tpu.memory_space<vmem>>, vector<256x128xbf16>
    %cst_8 = arith.constant dense<0.000000e+00> : vector<8x128xf32>
    %10 = tpu.matmul %8, %9, %cst_8 {dimension_numbers = #tpu.dot_dimension_numbers<[1], [0], [0], [1], [0, 0, 1, 1], [], []>} : vector<8x256xbf16>, vector<256x128xbf16>, vector<8x128xf32> -> vector<8x128xf32>
    %c0_9 = arith.constant 0 : index
    %c0_10 = arith.constant 0 : index
    %11 = vector.load %arg5[%c0_9, %c0_10] : memref<1x128xf32, #tpu.memory_space<vmem>>, vector<1x128xf32>
    %12 = vector.broadcast %11 : vector<1x128xf32> to vector<8x128xf32>
    %13 = arith.addf %10, %12 : vector<8x128xf32>
    %14 = arith.extf %0 : vector<8x128xbf16> to vector<8x128xf32>
    %15 = arith.addf %13, %14 : vector<8x128xf32>
    %c0_11 = arith.constant 0 : index
    %c0_12 = arith.constant 0 : index
    %16 = vector.load %arg6[%c0_11, %c0_12] : memref<1x128xf32, #tpu.memory_space<vmem>>, vector<1x128xf32>
    %c0_13 = arith.constant 0 : index
    %c0_14 = arith.constant 0 : index
    %17 = vector.load %arg7[%c0_13, %c0_14] : memref<1x128xf32, #tpu.memory_space<vmem>>, vector<1x128xf32>
    %cst_15 = arith.constant dense<0.000000e+00> : vector<8xf32>
    %18 = vector.multi_reduction <add>, %15, %cst_15 [1] : vector<8x128xf32> to vector<8xf32>
    %19 = vector.shape_cast %18 : vector<8xf32> to vector<8x1xf32>
    %cst_16 = arith.constant 7.812500e-03 : f32
    %20 = vector.broadcast %cst_16 : f32 to vector<8x1xf32>
    %21 = arith.mulf %19, %20 : vector<8x1xf32>
    %22 = arith.mulf %15, %15 : vector<8x128xf32>
    %cst_17 = arith.constant dense<0.000000e+00> : vector<8xf32>
    %23 = vector.multi_reduction <add>, %22, %cst_17 [1] : vector<8x128xf32> to vector<8xf32>
    %24 = vector.shape_cast %23 : vector<8xf32> to vector<8x1xf32>
    %cst_18 = arith.constant 7.812500e-03 : f32
    %25 = vector.broadcast %cst_18 : f32 to vector<8x1xf32>
    %26 = arith.mulf %24, %25 : vector<8x1xf32>
    %27 = arith.mulf %21, %21 : vector<8x1xf32>
    %28 = arith.subf %26, %27 : vector<8x1xf32>
    %cst_19 = arith.constant 0.000000e+00 : f32
    %29 = vector.broadcast %cst_19 : f32 to vector<8x1xf32>
    %30 = arith.maximumf %28, %29 : vector<8x1xf32>
    %31 = vector.broadcast %21 : vector<8x1xf32> to vector<8x128xf32>
    %32 = arith.subf %15, %31 : vector<8x128xf32>
    %cst_20 = arith.constant 9.99999974E-6 : f32
    %33 = vector.broadcast %cst_20 : f32 to vector<8x1xf32>
    %34 = arith.addf %30, %33 : vector<8x1xf32>
    %35 = math.rsqrt %34 : vector<8x1xf32>
    %36 = vector.broadcast %35 : vector<8x1xf32> to vector<8x128xf32>
    %37 = arith.mulf %32, %36 : vector<8x128xf32>
    %38 = vector.broadcast %16 : vector<1x128xf32> to vector<8x128xf32>
    %39 = arith.mulf %37, %38 : vector<8x128xf32>
    %40 = vector.broadcast %17 : vector<1x128xf32> to vector<8x128xf32>
    %41 = arith.addf %39, %40 : vector<8x128xf32>
    %c0_21 = arith.constant 0 : index
    %c0_22 = arith.constant 0 : index
    %42 = vector.load %arg8[%c0_21, %c0_22] : memref<8x128xf32, #tpu.memory_space<vmem>>, vector<8x128xf32>
    tpu.vector_store %arg8[%c0_21, %c0_22], %41 {strides = array<i32>} : memref<8x128xf32, #tpu.memory_space<vmem>>, vector<8x128xf32>,
    return
  }
  func.func @transform_0(%arg0: i32) -> (i32, i32) {
    %c0_i32 = arith.constant 0 : i32
    %c0_i32_0 = arith.constant 0 : i32
    return %arg0, %c0_i32 : i32, i32
  }
  func.func @transform_1(%arg0: i32) -> (i32, i32) {
    %c0_i32 = arith.constant 0 : i32
    %c0_i32_0 = arith.constant 0 : i32
    %c0_i32_1 = arith.constant 0 : i32
    return %c0_i32, %c0_i32_0 : i32, i32
  }
  func.func @transform_2(%arg0: i32) -> (i32, i32) {
    %c0_i32 = arith.constant 0 : i32
    %c0_i32_0 = arith.constant 0 : i32
    %c0_i32_1 = arith.constant 0 : i32
    return %c0_i32, %c0_i32_0 : i32, i32
  }
  func.func @transform_3(%arg0: i32) -> (i32, i32) {
    %c0_i32 = arith.constant 0 : i32
    %c0_i32_0 = arith.constant 0 : i32
    %c0_i32_1 = arith.constant 0 : i32
    return %c0_i32, %c0_i32_0 : i32, i32
  }
  func.func @transform_4(%arg0: i32) -> (i32, i32) {
    %c0_i32 = arith.constant 0 : i32
    %c0_i32_0 = arith.constant 0 : i32
    %c0_i32_1 = arith.constant 0 : i32
    return %c0_i32, %c0_i32_0 : i32, i32
  }
  func.func @transform_5(%arg0: i32) -> (i32, i32) {
    %c0_i32 = arith.constant 0 : i32
    %c0_i32_0 = arith.constant 0 : i32
    %c0_i32_1 = arith.constant 0 : i32
    return %c0_i32, %c0_i32_0 : i32, i32
  }
  func.func @transform_6(%arg0: i32) -> (i32, i32) {
    %c0_i32 = arith.constant 0 : i32
    %c0_i32_0 = arith.constant 0 : i32
    %c0_i32_1 = arith.constant 0 : i32
    return %c0_i32, %c0_i32_0 : i32, i32
  }
  func.func @transform_7(%arg0: i32) -> (i32, i32) {
    %c0_i32 = arith.constant 0 : i32
    %c0_i32_0 = arith.constant 0 : i32
    return %arg0, %c0_i32 : i32, i32
  }
}

</mosaic_0001>

<bundles_post_ra>
// kernel: tpu_custom_call.1
= control target key start
LH: loop header
LB: loop body
LE: loop exit
PB: predicated region body
PF: predicated region fallthrough
CT: control target
= control target key end

     0   :  { %12 = vsyncpa [#allocation3], 0  ;;  %s1428_s0 = inlined_call_operand.hbm [shape: bf16[16,128], index: 0, kind: input, shape index: {}]   ;;  %s1429_s1 = inlined_call_operand.hbm [shape: bf16[128,256], index: 1, kind: input, shape index: {}]   ;;  %s1430_s2 = inlined_call_operand.vmem [shape: f32[1,256], index: 2, kind: input, shape index: {}]   ;;  %s1431_s3 = inlined_call_operand.hbm [shape: bf16[256,128], index: 3, kind: input, shape index: {}]   ;;  %s1432_s4 = inlined_call_operand.vmem [shape: f32[1,128], index: 4, kind: input, shape index: {}]   ;;  %s1433_s5 = inlined_call_operand.vmem [shape: f32[1,128], index: 5, kind: input, shape index: {}]   ;;  %s1434_s6 = inlined_call_operand.vmem [shape: f32[1,128], index: 6, kind: input, shape index: {}]   ;;  %s1435_s7 = inlined_call_operand.hbm [shape: f32[16,128], index: 7, kind: output, shape index: {}]  }
   0x1   :  { %14 = vsyncpa [#allocation3 + $0x1], 0 }
   0x2   :  { %15 = vsyncpa [#allocation6], 0 }
   0x3   :  { %16 = vsyncpa [#allocation4], 0 }
   0x4   :  { %18 = vsyncpa [#allocation4 + $0x1], 0  ;;  %s1183_s24 = smov 0   ;;  %s1185_s25 = smov 0  }
   0x5   :  { %s1187_s26 = smov 0   ;;  %s1189_s27 = smov 0  }
   0x6 LB: > { %s1204_s28 = sadd.s32 4294967295, %s1132_s27   ;;  %s789_s29 = sadd.s32 4294967294, %s1132_s27   ;;  %s1132_s27 = sphi %s1189_s27, %s1455_s27   ;;  %s1128_s26 = sphi %s1187_s26, %s1454_s26   ;;  %s1124_s25 = sphi %s1185_s25, %s1453_s25   ;;  %s1120_s24 = sphi %s1183_s24, %s1452_s24  }
   0x7   : > { %p44_p0 = scmp.ne.s32.totalorder %s1124_s25, %s1120_s24  ;;  %p1436_p1 = scmp.eq.s32.totalorder %s1204_s28, 0 }
   0x8   : > { %p200_p3 = scmp.eq.s32.totalorder %s789_s29, 1  ;;  %p790_p5 = scmp.ge.s32.totalorder %s1132_s27, 1 }
   0x9   : > { %p1213_p4 = por %p1436_p1, %p44_p0  ;;  %p207_p7 = scmp.lt.s32.totalorder %s1132_s27, 3 }
   0xa   : > { %p1218_p6 = por %p200_p3, %p44_p0  ;;  %s1134_s10 = smov [#allocation5]  }
   0xb   : > { %s1439_s30 = scalar_select %p1213_p4, 1, 0 }
   0xc   : > { %s1440_s8 = scalar_select %p1218_p6, 1, 0 }
   0xd   : > { %p1223_p8 = pnand %p790_p5, %p207_p7  ;;  %s219_s11 = sshll.u32 %s1134_s10, 4  ;;  %s1227_s11 = int_to_ptr.vmem [resolvable:$true] %s219_s11 }
   0xe   : > { %s1135_s13 = smov [#allocation7]   ;;  %s976_s17 = scalar_lea.hbm %s1429_s1, 2048 }
   0xf   : > { %p874_p9 = pneg %p1223_p8  ;;  %s235_s14 = sshll.u32 %s1135_s13, 4  ;;  %s1238_s14 = int_to_ptr.vmem [resolvable:$true] %s235_s14 }
  0x10   : > { %p977_p12 = scmp.ne.s32.totalorder %s1429_s1, %s976_s17  ;;  %p983_p5 = scmp.lt.u32.totalorder %s976_s17, %s1429_s1 }
  0x11   : > { %p1234_p11 = pnand %p874_p9, %p1436_p1 }
  0x13   : > { %p978_p13 = pneg %p1234_p11 }
  0x15   : > { %p979_p0 = pnand %p978_p13, %p977_p12 }
  0x17   : > { %p980_p3 = pneg %p979_p0 }
  0x19   : > { %p985_p7 = pnand %p983_p5, %p980_p3 }
  0x1b   : > { %988 = shalt.err (!%p985_p7)
}
  0x1c   : > { %s989_s22 = scalar_lea.vmem %s1227_s11, 2048  ;;  %p997_p2 = scmp.lt.s32.totalorder %s1227_s11, %s1227_s11 }
  0x1d   : > { %p990_p9 = scmp.ne.s32.totalorder %s1227_s11, %s989_s22  ;;  %p998_p12 = scmp.lt.s32.totalorder %s989_s22, %s989_s22 }
  0x1f   : > { %p992_p10 = pnand %p990_p9, %p978_p13  ;;  %p999_p0 = por %p998_p12, %p997_p2 }
  0x21   : > { %p993_p1 = pneg %p992_p10 }
  0x23   : > { %p1000_p6 = pnand %p999_p0, %p993_p1 }
  0x25   : > { %1003 = shalt.err (!%p1000_p6)
}
  0x26   : > { %s1136_s23 = smov 128   ;;  %s1137_s29 = smov 8  }
  0x27   : > { %877 = dma.hbm_to_vmem [thread:$0]  (!%p1234_p11), %s1429_s1, 2048, %s1227_s11, [#allocation6], %s1136_s23, %s1136_s23, %s1137_s29  }
  0x28   : > { %s1004_s17 = scalar_lea.hbm %s1431_s3, 2048 }
  0x29   : > { %p1005_p2 = scmp.ne.s32.totalorder %s1431_s3, %s1004_s17  ;;  %p1011_p10 = scmp.lt.u32.totalorder %s1004_s17, %s1431_s3 }
  0x2b   : > { %p1007_p1 = pnand %p1005_p2, %p978_p13 }
  0x2d   : > { %p1008_p6 = pneg %p1007_p1 }
  0x2f   : > { %p1013_p3 = pnand %p1011_p10, %p1008_p6 }
  0x31   : > { %1016 = shalt.err (!%p1013_p3)
}
  0x32   : > { %s1017_s11 = scalar_lea.vmem %s1238_s14, 2048  ;;  %p1025_p12 = scmp.lt.s32.totalorder %s1238_s14, %s1238_s14 }
  0x33   : > { %p1018_p5 = scmp.ne.s32.totalorder %s1238_s14, %s1017_s11  ;;  %p1026_p0 = scmp.lt.s32.totalorder %s1017_s11, %s1017_s11 }
  0x35   : > { %p1020_p7 = pnand %p1018_p5, %p978_p13  ;;  %p1027_p2 = por %p1026_p0, %p1025_p12 }
  0x37   : > { %p1021_p9 = pneg %p1020_p7 }
  0x39   : > { %p1028_p1 = pnand %p1027_p2, %p1021_p9 }
  0x3b   : > { %1031 = shalt.err (!%p1028_p1)
}
  0x3c   : > { %s1138_s22 = smov 64   ;;  %s1139_s23 = smov 4  }
  0x3d   : > { %880 = dma.hbm_to_vmem [thread:$0]  (!%p1234_p11), %s1431_s3, 2048, %s1238_s14, [#allocation6], %s1138_s22, %s1138_s22, %s1139_s23  }
  0x3e   : > { %s1293_s13 = sadd.s32 1, %s1132_s27   ;;  %s31_s16 = sadd.s32 1, %s1128_s26 }
  0x3f   : > { %s28_s15 = ssub.s32 %s1132_s27, %s1293_s13  ;;  %p38_p6 = scmp.ne.s32.totalorder %s1128_s26, %s1124_s25 }
  0x40   : > { %p29_p13 = scmp.eq.s32.totalorder %s28_s15, 0  ;;  %p39_p10 = scmp.eq.s32.totalorder %s1132_s27, 0 }
  0x41   : > { %p1443_p5 = scmp.eq.s32.totalorder %s1204_s28, 1  ;;  %p891_p9 = scmp.lt.s32.totalorder %s1132_s27, 2 }
  0x42   : > { %s1302_s17 = scalar_select %p29_p13, %s1128_s26, %s31_s16  }
  0x43   : > { %p40_p3 = por %p39_p10, %p38_p6  ;;  %p1306_p7 = por %p1443_p5, %p38_p6 }
  0x44   : > { %s258_s12 = sand.u32 1, %s1128_s26   ;;  %s795_s14 = sshll.u32 %s1132_s27, 6 }
  0x45   : > { %s1444_s18 = scalar_select %p1306_p7, 1, 0 }
  0x46   : > { %s794_s19 = sshll.u32 %s258_s12, 2  ;;  %s1316_s11 = scalar_lea.hbm %s1428_s0, %s795_s14 }
  0x47   : > { %s262_s22 = scalar_lea.vmem [#allocation2], %s794_s19  ;;  %p1320_p11 = pnand %p891_p9, %p40_p3 }
  0x48   : > { %s269_s23 = sshll.u32 %s262_s22, 4  ;;  %s259_s10 = scalar_lea.sflag [#allocation3], %s258_s12  ;;  %s1318_s23 = int_to_ptr.vmem [resolvable:$true] %s269_s23 }
  0x49   : > { %s1032_s15 = scalar_lea.hbm %s1316_s11, 64  ;;  %p1034_p0 = pneg %p1320_p11 }
  0x4a   : > { %p1033_p12 = scmp.ne.s32.totalorder %s1316_s11, %s1032_s15  ;;  %s1037_s14 = scalar_lea.hbm %s1428_s0, 128 }
  0x4b   : > { %p1038_p13 = scmp.lt.u32.totalorder %s1316_s11, %s1428_s0  ;;  %p1039_p6 = scmp.lt.u32.totalorder %s1037_s14, %s1032_s15 }
  0x4c   : > { %p1035_p2 = pnand %p1034_p0, %p1033_p12  ;;  %p1041_p3 = scmp.lt.u32.totalorder %s1032_s15, %s1316_s11 }
  0x4d   : > { %p1040_p10 = por %p1039_p6, %p1038_p13 }
  0x4e   : > { %p1036_p1 = pneg %p1035_p2 }
  0x4f   : > { %p1042_p5 = por %p1041_p3, %p1040_p10 }
  0x51   : > { %p1043_p9 = pnand %p1042_p5, %p1036_p1 }
  0x53   : > { %1046 = shalt.err (!%p1043_p9)
}
  0x54   : > { %s1047_s12 = scalar_lea.vmem %s1318_s23, 64  ;;  %s1140_s22 = smov [#allocation2]  }
  0x55   : > { %p1048_p12 = scmp.ne.s32.totalorder %s1318_s23, %s1047_s12  ;;  %s1052_s16 = sshll.u32 %s1140_s22, 4  ;;  %s1053_s16 = int_to_ptr.vmem [resolvable:$false] %s1052_s16 }
  0x56   : > { %s1054_s19 = scalar_lea.vmem %s1053_s16, 128  ;;  %p1055_p4 = scmp.lt.s32.totalorder %s1318_s23, %s1053_s16 }
  0x57   : > { %p1050_p2 = pnand %p1048_p12, %p1034_p0  ;;  %p1056_p13 = scmp.lt.s32.totalorder %s1054_s19, %s1047_s12 }
  0x59   : > { %p1051_p7 = pneg %p1050_p2  ;;  %p1057_p6 = por %p1056_p13, %p1055_p4 }
  0x5b   : > { %p1058_p10 = pnand %p1057_p6, %p1051_p7 }
  0x5d   : > { %1061 = shalt.err (!%p1058_p10)
}
  0x5e   : > { %884 = dma.hbm_to_vmem [thread:$0]  (!%p1320_p11), %s1316_s11, 64, %s1318_s23, %s259_s10  }
  0x5f   : > { %278 = sbr.rel (%p1223_p8) target bundleno = 763 (0x2fb), region = 48  ;;  %s1352_s15 = sand.u32 (!%p1223_p8), 1, %s1124_s25  }
  0x60   : > { %s797_s14 = sshll.u32 (!%p1223_p8), %s1352_s15, 2  ;;  %s281_s20 = scalar_lea.sflag (!%p1223_p8), [#allocation3], %s1352_s15 }
  0x61   : > { %s1356_s21 = scalar_lea.vmem (!%p1223_p8), [#allocation2], %s797_s14  ;;  %p1446_p4 = scmp.ne.s32.totalorder (!%p1223_p8), %s1439_s30, 0 }
  0x66   : > { %1107 = dma.done.wait (%p1446_p4), %s281_s20, 64  }
  0x67   : > { %1109 = vsyncadd (%p1446_p4), %s281_s20, 4294967232  ;;  %p1447_p7 = scmp.eq.s32.totalorder %s1204_s28, 0 }
  0x69   : > { %1111 = dma.done.wait (%p1447_p7), [#allocation6], 4096   ;;  %p1448_p8 = pmov %p1447_p7 }
  0x6a   : > { %v1141_v0 = vmov 0   ;;  %v934_v1 = vld [vmem:[#allocation5 + $0x4] ss:$8 sps:$4 sm:$0xff]   ;;  %v936_v2 = vld [vmem:[#allocation5] ss:$8 sps:$4 sm:$0xff]   ;;  %v962_v15 = vld [vmem:[#allocation7 + $0x50] sm:$0xff]   ;;  %v343_v34 = vlaneseq }
  0x6b   : > { %1113 = vsyncadd (%p1448_p8), [#allocation6], 4294963200  ;;  %465 = vmatprep.mubr.bf16.mxu0 %v1141_v0  ;;  %433 = vmatprep.subr.bf16.mxu0 %v934_v1  ;;  %v937_v3 = vld [vmem:[#allocation5 + $0x14] ss:$8 sps:$4 sm:$0xff]   ;;  %v939_v4 = vld [vmem:[#allocation5 + $0x10] ss:$8 sps:$4 sm:$0xff]  }
  0x6c   : > { %434 = vmatpush1.bf16.msra.mxu0 %v936_v2  ;;  %v940_v5 = vld [vmem:[#allocation5 + $0x24] ss:$8 sps:$4 sm:$0xff]   ;;  %v942_v6 = vld [vmem:[#allocation5 + $0x20] ss:$8 sps:$4 sm:$0xff]   ;;  %v943_v7 = vld [vmem:[#allocation5 + $0x34] ss:$8 sps:$4 sm:$0xff]  }
  0x6d   : > { %435 = vmatprep.subr.bf16.mxu0 %v937_v3  ;;  %v945_v8 = vld [vmem:[#allocation5 + $0x30] ss:$8 sps:$4 sm:$0xff]   ;;  %v946_v9 = vld [vmem:[#allocation5 + $0x44] ss:$8 sps:$4 sm:$0xff]   ;;  %v948_v12 = vld [vmem:[#allocation5 + $0x40] ss:$8 sps:$4 sm:$0xff]  }
  0x6e   : > { %v958_v10 = vld [vmem:[#allocation7 + $0x40] sm:$0xff]   ;;  %v960_v13 = vld [vmem:[#allocation7 + $0x48] sm:$0xff]   ;;  %v949_v16 = vld [vmem:[#allocation5 + $0x54] ss:$8 sps:$4 sm:$0xff]   ;;  %v344_v35 = vshrl.u32 %v343_v34, 7  ;;  %s800_s29 = sshll.u32 %s1352_s15, 3 }
  0x6f   : > { %v959_v11 = vld [vmem:[#allocation7] sm:$0xff]   ;;  %840 = vmatprep.subr.bf16.mxu1 %v958_v10  ;;  %v961_v14 = vld [vmem:[#allocation7 + $0x8] sm:$0xff]   ;;  %v951_v17 = vld [vmem:[#allocation5 + $0x50] ss:$8 sps:$4 sm:$0xff]   ;;  %s837_s19 = sshll.u32 %s1204_s28, 7  ;;  %s322_s14 = scalar_lea.vmem [#allocation8], %s800_s29 }
  0x70   : > { %436 = vmatpush1.bf16.msra.mxu0 %v939_v4  ;;  %841 = vmatpush3.bf16.msra.mxu1 %v959_v11  ;;  %v963_v18 = vld [vmem:[#allocation7 + $0x10] sm:$0xff]   ;;  %v964_v19 = vld [vmem:[#allocation7 + $0x58] sm:$0xff]   ;;  %v952_v20 = vld [vmem:[#allocation5 + $0x64] ss:$8 sps:$4 sm:$0xff]   ;;  %v345_v36 = vsub.s32 0, %v344_v35  ;;  %v349_v38 = vsub.s32 1, %v344_v35  ;;  %s1384_s9 = scalar_lea.hbm %s1435_s7, %s837_s19 }
  0x71   : > { %437 = vmatprep.subr.bf16.mxu0 %v940_v5  ;;  %842 = vmatprep.subr.bf16.mxu1 %v960_v13  ;;  %v954_v21 = vld [vmem:[#allocation5 + $0x60] ss:$8 sps:$4 sm:$0xff]   ;;  %v955_v22 = vld [vmem:[#allocation5 + $0x74] ss:$8 sps:$4 sm:$0xff]   ;;  %v957_v26 = vld [vmem:[#allocation5 + $0x70] ss:$8 sps:$4 sm:$0xff]  }
  0x72   : > { %v965_v23 = vld [vmem:[#allocation7 + $0x18] sm:$0xff]   ;;  %v966_v24 = vld [vmem:[#allocation7 + $0x60] sm:$0xff]   ;;  %v968_v27 = vld [vmem:[#allocation7 + $0x68] sm:$0xff]   ;;  %s700_s20 = sshll.u32 %s322_s14, 4  ;;  %s687_s11 = scalar_lea.sflag [#allocation4], %s1352_s15  ;;  %s1386_s20 = int_to_ptr.vmem [resolvable:$true] %s700_s20 }
  0x73   : > { %v967_v25 = vld [vmem:[#allocation7 + $0x20] sm:$0xff]   ;;  %v969_v28 = vld [vmem:[#allocation7 + $0x28] sm:$0xff]   ;;  %v324_v29 = vld [vmem:[%s1356_s21] sm:$0xf]  ;;  %s1062_s23 = scalar_lea.vmem %s1386_s20, 128  ;;  %p1449_p0 = scmp.ne.s32.totalorder %s1444_s18, 0 }
  0x74   : > { %438 = vmatpush1.bf16.msra.mxu0 %v942_v6  ;;  %843 = vmatpush3.bf16.msra.mxu1 %v961_v14  ;;  %v970_v30 = vld [vmem:[#allocation7 + $0x70] sm:$0xff]   ;;  %v972_v32 = vld [vmem:[#allocation7 + $0x78] sm:$0xff]   ;;  %v653_v54 = vunpack.c.l.bf16 %v324_v29  ;;  %p1063_p11 = scmp.ne.s32.totalorder %s1386_s20, %s1062_s23  ;;  %s1142_s28 = smov [#allocation8]  }
  0x75   : > { %439 = vmatprep.subr.bf16.mxu0 %v943_v7  ;;  %844 = vmatprep.subr.bf16.mxu1 %v962_v15  ;;  %v971_v31 = vld [vmem:[#allocation7 + $0x30] sm:$0xff]   ;;  %v973_v33 = vld [vmem:[#allocation7 + $0x38] sm:$0xff]   ;;  %s1066_s29 = sshll.u32 %s1142_s28, 4  ;;  %s1067_s29 = int_to_ptr.vmem [resolvable:$false] %s1066_s29 }
  0x76   : > { %v341_v37 = vld [vmem:[%s1430_s2] sm:$0x3]  ;;  %p1064_p1 = pnand %p1063_p11, %p1449_p0  ;;  %s1068_s10 = scalar_lea.vmem %s1067_s29, 256 }
  0x77   : > { %v346_v39 = vrot.slane %v341_v37, %v345_v36  ;;  %v350_v40 = vrot.slane %v341_v37, %v349_v38  ;;  %v817_v52 = vld [vmem:[%s1432_s4] ss:$0 sm:$0xff]  ;;  %p1069_p5 = scmp.lt.s32.totalorder %s1386_s20, %s1067_s29  ;;  %p1070_p9 = scmp.lt.s32.totalorder %s1068_s10, %s1062_s23 }
  0x78   : > { %440 = vmatpush1.bf16.msra.mxu0 %v945_v8  ;;  %845 = vmatpush3.bf16.msra.mxu1 %v963_v18  ;;  %v834_v7 = vld [vmem:[%s1433_s5] ss:$0 sm:$0xff]  ;;  %p1065_p3 = pneg %p1064_p1 }
  0x79   : > { %441 = vmatprep.subr.bf16.mxu0 %v946_v9  ;;  %846 = vmatprep.subr.bf16.mxu1 %v964_v19  ;;  %v835_v9 = vld [vmem:[%s1434_s6] ss:$0 sm:$0xff]  ;;  %p1071_p12 = por %p1070_p9, %p1069_p5 }
  0x7b   : > { %p1072_p2 = pnand %p1071_p12, %p1065_p3 }
  0x7c   : > { %442 = vmatpush1.bf16.msra.mxu0 %v948_v12  ;;  %847 = vmatpush3.bf16.msra.mxu1 %v965_v23 }
  0x7d   : > { %443 = vmatprep.subr.bf16.mxu0 %v949_v16  ;;  %848 = vmatprep.subr.bf16.mxu1 %v966_v24 }
  0x80   : > { %444 = vmatpush1.bf16.msra.mxu0 %v951_v17  ;;  %849 = vmatpush3.bf16.msra.mxu1 %v967_v25 }
  0x81   : > { %445 = vmatprep.subr.bf16.mxu0 %v952_v20  ;;  %850 = vmatprep.subr.bf16.mxu1 %v968_v27 }
  0x84   : > { %446 = vmatpush1.bf16.msra.mxu0 %v954_v21  ;;  %851 = vmatpush3.bf16.msra.mxu1 %v969_v28 }
  0x85   : > { %447 = vmatprep.subr.bf16.mxu0 %v955_v22  ;;  %852 = vmatprep.subr.bf16.mxu1 %v970_v30 }
  0x88   : > { %448 = vmatpush1.bf16.msra.mxu0 %v957_v26  ;;  %853 = vmatpush3.bf16.msra.mxu1 %v971_v31 }
  0x89   : > { %854 = vmatprep.subr.bf16.mxu1 %v972_v32 }
  0x8b   : > { %466 = vmatmul.mubr.bf16.vlgmr.msra.gmra.mrb[0].mxu0 %v324_v29 }
  0x8c   : > { %855 = vmatpush3.bf16.msra.mxu1 %v973_v33 }
 0x15e   : > { %v467_v41 = vpop.f32.mrb[0].mxu0 }
 0x15f   : > { %v468_v42 = vadd.f32 %v467_v41, %v346_v39  ;;  %v469_v43 = vpop.f32.mrb[1].mxu0 }
 0x160   : > { %v470_v44 = vadd.f32 %v469_v43, %v350_v40  ;;  %v471_v45 = vpop.f32.mrb[2].mxu0 }
 0x161   : > { %v474_v46 = vmax.f32 %v468_v42, 0.0  ;;  %v472_v47 = vpop.f32.mrb[3].mxu0 }
 0x162   : > { %v475_v48 = vmax.f32 %v470_v44, 0.0 }
 0x163   : > { %v476_v50 = vpack.c.bf16 %v474_v46, %v474_v46 }
 0x164   : > { %v477_v49 = vpack.c.bf16 %v475_v48, %v475_v48 }
 0x166   : > { %645 = vmatprep.mubr.bf16.mxu1 %v477_v49 }
 0x167   : > { %646 = vmatmul.mubr.bf16.vlgmr.msra.gmra.mrb[0].mxu1 %v476_v50 }
 0x23a   : > { %v856_v51 = vpop.f32.mrb[0].mxu1 }
 0x23b   : > { %v857_v53 = vpop.f32.mrb[1].mxu1 }
 0x23c   : > { %v858_v55 = vadd.f32 %v857_v53, %v856_v51  ;;  %v859_v56 = vpop.f32.mrb[2].mxu1 }
 0x23d   : > { %v860_v57 = vpop.f32.mrb[3].mxu1 }
 0x23e   : > { %v648_v58 = vadd.f32 %v858_v55, %v817_v52 }
 0x240   : > { %v654_v59 = vadd.f32 %v653_v54, %v648_v58 }
 0x242   : > { %657 = vadd.xlane.f32.xlu0 %v654_v59  ;;  %v660_v60 = vmul.f32 %v654_v59, %v654_v59 }
 0x246   : > { %661 = vadd.xlane.f32.xlu0 %v660_v60 }
 0x2cf   : > { %v658_v61 = vpop.xlane.xlu0 %657 }
 0x2d0   : > { %v659_v62 = vmul.f32 0.0078125, %v658_v61 }
 0x2d2   : > { %v664_v0 = vmul.f32 %v659_v62, %v659_v62  ;;  %v667_v5 = vsub.f32 %v654_v59, %v659_v62 }
 0x2d3   : > { %v662_v63 = vpop.xlane.xlu0 %661 }
 0x2d4   : > { %v663_v1 = vmul.f32 0.0078125, %v662_v63 }
 0x2d6   : > { %v665_v2 = vsub.f32 %v663_v1, %v664_v0 }
 0x2d8   : > { %v666_v3 = vmax.f32 %v665_v2, 0.0 }
 0x2da   : > { %v668_v4 = vadd.f32 1e-05, %v666_v3 }
 0x2dc   : > { %974 = vrsqrt.f32 %v668_v4 }
 0x2e6   : > { %v975_v6 = vpop.eup %974 }
 0x2e7   : > { %v670_v8 = vmul.f32 %v975_v6, %v667_v5 }
 0x2e9   : > { %v677_v10 = vmul.f32 %v834_v7, %v670_v8 }
 0x2eb   : > { %v684_v11 = vadd.f32 %v835_v9, %v677_v10 }
 0x2ed   : > { %685 = vst [vmem:[%s322_s14] sm:$0xff] %v684_v11 }
 0x2ee   : > { %1075 = shalt.err (!%p1072_p2)
}
 0x2ef   : > { %s1076_s15 = scalar_lea.hbm %s1384_s9, 128  ;;  %s1080_s16 = scalar_lea.hbm %s1435_s7, 256 }
 0x2f0   : > { %p1077_p13 = scmp.ne.s32.totalorder %s1384_s9, %s1076_s15  ;;  %p1081_p4 = scmp.lt.u32.totalorder %s1384_s9, %s1435_s7 }
 0x2f1   : > { %p1082_p7 = scmp.lt.u32.totalorder %s1080_s16, %s1076_s15  ;;  %p1084_p11 = scmp.lt.u32.totalorder %s1076_s15, %s1384_s9 }
 0x2f2   : > { %p1078_p6 = pnand %p1077_p13, %p1449_p0 }
 0x2f3   : > { %p1083_p8 = por %p1082_p7, %p1081_p4 }
 0x2f4   : > { %p1079_p10 = pneg %p1078_p6 }
 0x2f5   : > { %p1085_p1 = por %p1084_p11, %p1083_p8 }
 0x2f7   : > { %p1086_p3 = pnand %p1085_p1, %p1079_p10 }
 0x2f9   : > { %1089 = shalt.err (!%p1086_p3)
}
 0x2fa   : > { %872 = dma.vmem_to_hbm [thread:$0]  (%p1449_p0), %s1386_s20, 128, %s1384_s9, %s687_s11  }
 0x2fb PF: > { %s712_s21 = sand.u32 1, %s1120_s24   ;;  %p1450_p5 = scmp.ne.s32.totalorder %s1440_s8, 0 }
 0x2fc   : > { %p1451_p9 = scmp.ge.s32.totalorder %s1132_s27, 2  ;;  %s713_s30 = scalar_lea.sflag [#allocation4], %s712_s21 }
 0x2fe   : > { %p886_p12 = pnand %p1451_p9, %p1450_p5 }
 0x300   : > { %1115 = dma.done.wait (!%p886_p12), %s713_s30, 128  }
 0x301   : > { %1117 = vsyncadd (!%p886_p12), %s713_s30, 4294967168  ;;  %p21_p2 = scmp.ge.s32.totalorder %s1293_s13, 4   ;;  %s1452_s24 = smov %s1124_s25 }
 0x302   : > { %s1453_s25 = smov %s1128_s26  ;;  %s1454_s26 = smov %s1302_s17 }
 0x303   : > { %s1455_s27 = smov %s1293_s13  ;;  %23 = sbr.rel (!%p21_p2) target bundleno = 6 (0x6), region = 101 }
 0x30a   :  { %718 = vsyncpa [#allocation3], 1 }
 0x30b   :  { %720 = vsyncpa [#allocation3 + $0x1], 1 }
 0x30c   :  { %721 = vsyncpa [#allocation6], 1 }
 0x30d   :  { %722 = vsyncpa [#allocation4], 1 }
 0x30e   :  { %724 = vsyncpa [#allocation4 + $0x1], 1 }

// kernel: tpu_custom_call.1
= control target key start
LH: loop header
LB: loop body
LE: loop exit
PB: predicated region body
PF: predicated region fallthrough
CT: control target
= control target key end

     0   :  { %12 = vsyncpa [#allocation3], 0  ;;  %s1428_s0 = inlined_call_operand.hbm [shape: bf16[16,128], index: 0, kind: input, shape index: {}]   ;;  %s1429_s1 = inlined_call_operand.hbm [shape: bf16[128,256], index: 1, kind: input, shape index: {}]   ;;  %s1430_s2 = inlined_call_operand.vmem [shape: f32[1,256], index: 2, kind: input, shape index: {}]   ;;  %s1431_s3 = inlined_call_operand.hbm [shape: bf16[256,128], index: 3, kind: input, shape index: {}]   ;;  %s1432_s4 = inlined_call_operand.vmem [shape: f32[1,128], index: 4, kind: input, shape index: {}]   ;;  %s1433_s5 = inlined_call_operand.vmem [shape: f32[1,128], index: 5, kind: input, shape index: {}]   ;;  %s1434_s6 = inlined_call_operand.vmem [shape: f32[1,128], index: 6, kind: input, shape index: {}]   ;;  %s1435_s7 = inlined_call_operand.hbm [shape: f32[16,128], index: 7, kind: output, shape index: {}]  }
   0x1   :  { %14 = vsyncpa [#allocation3 + $0x1], 0 }
   0x2   :  { %15 = vsyncpa [#allocation6], 0 }
   0x3   :  { %16 = vsyncpa [#allocation4], 0 }
   0x4   :  { %18 = vsyncpa [#allocation4 + $0x1], 0  ;;  %s1183_s24 = smov 0   ;;  %s1185_s25 = smov 0  }
   0x5   :  { %s1187_s26 = smov 0   ;;  %s1189_s27 = smov 0  }
   0x6 LB: > { %s1204_s28 = sadd.s32 4294967295, %s1132_s27   ;;  %s789_s29 = sadd.s32 4294967294, %s1132_s27   ;;  %s1132_s27 = sphi %s1189_s27, %s1455_s27   ;;  %s1128_s26 = sphi %s1187_s26, %s1454_s26   ;;  %s1124_s25 = sphi %s1185_s25, %s1453_s25   ;;  %s1120_s24 = sphi %s1183_s24, %s1452_s24  }
   0x7   : > { %p44_p0 = scmp.ne.s32.totalorder %s1124_s25, %s1120_s24  ;;  %p1436_p1 = scmp.eq.s32.totalorder %s1204_s28, 0 }
   0x8   : > { %p200_p3 = scmp.eq.s32.totalorder %s789_s29, 1  ;;  %p790_p5 = scmp.ge.s32.totalorder %s1132_s27, 1 }
   0x9   : > { %p1213_p4 = por %p1436_p1, %p44_p0  ;;  %p207_p7 = scmp.lt.s32.totalorder %s1132_s27, 3 }
   0xa   : > { %p1218_p6 = por %p200_p3, %p44_p0  ;;  %s1134_s10 = smov [#allocation5]  }
   0xb   : > { %s1439_s30 = scalar_select %p1213_p4, 1, 0 }
   0xc   : > { %s1440_s8 = scalar_select %p1218_p6, 1, 0 }
   0xd   : > { %p1223_p8 = pnand %p790_p5, %p207_p7  ;;  %s219_s11 = sshll.u32 %s1134_s10, 4  ;;  %s1227_s11 = int_to_ptr.vmem [resolvable:$true] %s219_s11 }
   0xe   : > { %s1135_s13 = smov [#allocation7]   ;;  %s976_s17 = scalar_lea.hbm %s1429_s1, 2048 }
   0xf   : > { %p874_p9 = pneg %p1223_p8  ;;  %s235_s14 = sshll.u32 %s1135_s13, 4  ;;  %s1238_s14 = int_to_ptr.vmem [resolvable:$true] %s235_s14 }
  0x10   : > { %p977_p12 = scmp.ne.s32.totalorder %s1429_s1, %s976_s17  ;;  %p983_p5 = scmp.lt.u32.totalorder %s976_s17, %s1429_s1 }
  0x11   : > { %p1234_p11 = pnand %p874_p9, %p1436_p1 }
  0x13   : > { %p978_p13 = pneg %p1234_p11 }
  0x15   : > { %p979_p0 = pnand %p978_p13, %p977_p12 }
  0x17   : > { %p980_p3 = pneg %p979_p0 }
  0x19   : > { %p985_p7 = pnand %p983_p5, %p980_p3 }
  0x1b   : > { %988 = shalt.err (!%p985_p7)
}
  0x1c   : > { %s989_s22 = scalar_lea.vmem %s1227_s11, 2048  ;;  %p997_p2 = scmp.lt.s32.totalorder %s1227_s11, %s1227_s11 }
  0x1d   : > { %p990_p9 = scmp.ne.s32.totalorder %s1227_s11, %s989_s22  ;;  %p998_p12 = scmp.lt.s32.totalorder %s989_s22, %s989_s22 }
  0x1f   : > { %p992_p10 = pnand %p990_p9, %p978_p13  ;;  %p999_p0 = por %p998_p12, %p997_p2 }
  0x21   : > { %p993_p1 = pneg %p992_p10 }
  0x23   : > { %p1000_p6 = pnand %p999_p0, %p993_p1 }
  0x25   : > { %1003 = shalt.err (!%p1000_p6)
}
  0x26   : > { %s1136_s23 = smov 128   ;;  %s1137_s29 = smov 8  }
  0x27   : > { %877 = dma.hbm_to_vmem [thread:$0]  (!%p1234_p11), %s1429_s1, 2048, %s1227_s11, [#allocation6], %s1136_s23, %s1136_s23, %s1137_s29  }
  0x28   : > { %s1004_s17 = scalar_lea.hbm %s1431_s3, 2048 }
  0x29   : > { %p1005_p2 = scmp.ne.s32.totalorder %s1431_s3, %s1004_s17  ;;  %p1011_p10 = scmp.lt.u32.totalorder %s1004_s17, %s1431_s3 }
  0x2b   : > { %p1007_p1 = pnand %p1005_p2, %p978_p13 }
  0x2d   : > { %p1008_p6 = pneg %p1007_p1 }
  0x2f   : > { %p1013_p3 = pnand %p1011_p10, %p1008_p6 }
  0x31   : > { %1016 = shalt.err (!%p1013_p3)
}
  0x32   : > { %s1017_s11 = scalar_lea.vmem %s1238_s14, 2048  ;;  %p1025_p12 = scmp.lt.s32.totalorder %s1238_s14, %s1238_s14 }
  0x33   : > { %p1018_p5 = scmp.ne.s32.totalorder %s1238_s14, %s1017_s11  ;;  %p1026_p0 = scmp.lt.s32.totalorder %s1017_s11, %s1017_s11 }
  0x35   : > { %p1020_p7 = pnand %p1018_p5, %p978_p13  ;;  %p1027_p2 = por %p1026_p0, %p1025_p12 }
  0x37   : > { %p1021_p9 = pneg %p1020_p7 }
  0x39   : > { %p1028_p1 = pnand %p1027_p2, %p1021_p9 }
  0x3b   : > { %1031 = shalt.err (!%p1028_p1)
}
  0x3c   : > { %s1138_s22 = smov 64   ;;  %s1139_s23 = smov 4  }
  0x3d   : > { %880 = dma.hbm_to_vmem [thread:$0]  (!%p1234_p11), %s1431_s3, 2048, %s1238_s14, [#allocation6], %s1138_s22, %s1138_s22, %s1139_s23  }
  0x3e   : > { %s1293_s13 = sadd.s32 1, %s1132_s27   ;;  %s31_s16 = sadd.s32 1, %s1128_s26 }
  0x3f   : > { %s28_s15 = ssub.s32 %s1132_s27, %s1293_s13  ;;  %p38_p6 = scmp.ne.s32.totalorder %s1128_s26, %s1124_s25 }
  0x40   : > { %p29_p13 = scmp.eq.s32.totalorder %s28_s15, 0  ;;  %p39_p10 = scmp.eq.s32.totalorder %s1132_s27, 0 }
  0x41   : > { %p1443_p5 = scmp.eq.s32.totalorder %s1204_s28, 1  ;;  %p891_p9 = scmp.lt.s32.totalorder %s1132_s27, 2 }
  0x42   : > { %s1302_s17 = scalar_select %p29_p13, %s1128_s26, %s31_s16  }
  0x43   : > { %p40_p3 = por %p39_p10, %p38_p6  ;;  %p1306_p7 = por %p1443_p5, %p38_p6 }
  0x44   : > { %s258_s12 = sand.u32 1, %s1128_s26   ;;  %s795_s14 = sshll.u32 %s1132_s27, 6 }
  0x45   : > { %s1444_s18 = scalar_select %p1306_p7, 1, 0 }
  0x46   : > { %s794_s19 = sshll.u32 %s258_s12, 2  ;;  %s1316_s11 = scalar_lea.hbm %s1428_s0, %s795_s14 }
  0x47   : > { %s262_s22 = scalar_lea.vmem [#allocation2], %s794_s19  ;;  %p1320_p11 = pnand %p891_p9, %p40_p3 }
  0x48   : > { %s269_s23 = sshll.u32 %s262_s22, 4  ;;  %s259_s10 = scalar_lea.sflag [#allocation3], %s258_s12  ;;  %s1318_s23 = int_to_ptr.vmem [resolvable:$true] %s269_s23 }
  0x49   : > { %s1032_s15 = scalar_lea.hbm %s1316_s11, 64  ;;  %p1034_p0 = pneg %p1320_p11 }
  0x4a   : > { %p1033_p12 = scmp.ne.s32.totalorder %s1316_s11, %s1032_s15  ;;  %s1037_s14 = scalar_lea.hbm %s1428_s0, 128 }
  0x4b   : > { %p1038_p13 = scmp.lt.u32.totalorder %s1316_s11, %s1428_s0  ;;  %p1039_p6 = scmp.lt.u32.totalorder %s1037_s14, %s1032_s15 }
  0x4c   : > { %p1035_p2 = pnand %p1034_p0, %p1033_p12  ;;  %p1041_p3 = scmp.lt.u32.totalorder %s1032_s15, %s1316_s11 }
  0x4d   : > { %p1040_p10 = por %p1039_p6, %p1038_p13 }
  0x4e   : > { %p1036_p1 = pneg %p1035_p2 }
  0x4f   : > { %p1042_p5 = por %p1041_p3, %p1040_p10 }
  0x51   : > { %p1043_p9 = pnand %p1042_p5, %p1036_p1 }
  0x53   : > { %1046 = shalt.err (!%p1043_p9)
}
  0x54   : > { %s1047_s12 = scalar_lea.vmem %s1318_s23, 64  ;;  %s1140_s22 = smov [#allocation2]  }
  0x55   : > { %p1048_p12 = scmp.ne.s32.totalorder %s1318_s23, %s1047_s12  ;;  %s1052_s16 = sshll.u32 %s1140_s22, 4  ;;  %s1053_s16 = int_to_ptr.vmem [resolvable:$false] %s1052_s16 }
  0x56   : > { %s1054_s19 = scalar_lea.vmem %s1053_s16, 128  ;;  %p1055_p4 = scmp.lt.s32.totalorder %s1318_s23, %s1053_s16 }
  0x57   : > { %p1050_p2 = pnand %p1048_p12, %p1034_p0  ;;  %p1056_p13 = scmp.lt.s32.totalorder %s1054_s19, %s1047_s12 }
  0x59   : > { %p1051_p7 = pneg %p1050_p2  ;;  %p1057_p6 = por %p1056_p13, %p1055_p4 }
  0x5b   : > { %p1058_p10 = pnand %p1057_p6, %p1051_p7 }
  0x5d   : > { %1061 = shalt.err (!%p1058_p10)
}
  0x5e   : > { %884 = dma.hbm_to_vmem [thread:$0]  (!%p1320_p11), %s1316_s11, 64, %s1318_s23, %s259_s10  }
  0x5f   : > { %278 = sbr.rel (%p1223_p8) target bundleno = 763 (0x2fb), region = 48  ;;  %s1352_s15 = sand.u32 (!%p1223_p8), 1, %s1124_s25  }
  0x60   : > { %s797_s14 = sshll.u32 (!%p1223_p8), %s1352_s15, 2  ;;  %s281_s20 = scalar_lea.sflag (!%p1223_p8), [#allocation3], %s1352_s15 }
  0x61   : > { %s1356_s21 = scalar_lea.vmem (!%p1223_p8), [#allocation2], %s797_s14  ;;  %p1446_p4 = scmp.ne.s32.totalorder (!%p1223_p8), %s1439_s30, 0 }
  0x66   : > { %1107 = dma.done.wait (%p1446_p4), %s281_s20, 64  }
  0x67   : > { %1109 = vsyncadd (%p1446_p4), %s281_s20, 4294967232  ;;  %p1447_p7 = scmp.eq.s32.totalorder %s1204_s28, 0 }
  0x69   : > { %1111 = dma.done.wait (%p1447_p7), [#allocation6], 4096   ;;  %p1448_p8 = pmov %p1447_p7 }
  0x6a   : > { %v1141_v0 = vmov 0   ;;  %v934_v1 = vld [vmem:[#allocation5 + $0x4] ss:$8 sps:$4 sm:$0xff]   ;;  %v936_v2 = vld [vmem:[#allocation5] ss:$8 sps:$4 sm:$0xff]   ;;  %v962_v15 = vld [vmem:[#allocation7 + $0x50] sm:$0xff]   ;;  %v343_v34 = vlaneseq }
  0x6b   : > { %1113 = vsyncadd (%p1448_p8), [#allocation6], 4294963200  ;;  %465 = vmatprep.mubr.bf16.mxu0 %v1141_v0  ;;  %433 = vmatprep.subr.bf16.mxu0 %v934_v1  ;;  %v937_v3 = vld [vmem:[#allocation5 + $0x14] ss:$8 sps:$4 sm:$0xff]   ;;  %v939_v4 = vld [vmem:[#allocation5 + $0x10] ss:$8 sps:$4 sm:$0xff]  }
  0x6c   : > { %434 = vmatpush1.bf16.msra.mxu0 %v936_v2  ;;  %v940_v5 = vld [vmem:[#allocation5 + $0x24] ss:$8 sps:$4 sm:$0xff]   ;;  %v942_v6 = vld [vmem:[#allocation5 + $0x20] ss:$8 sps:$4 sm:$0xff]   ;;  %v943_v7 = vld [vmem:[#allocation5 + $0x34] ss:$8 sps:$4 sm:$0xff]  }
  0x6d   : > { %435 = vmatprep.subr.bf16.mxu0 %v937_v3  ;;  %v945_v8 = vld [vmem:[#allocation5 + $0x30] ss:$8 sps:$4 sm:$0xff]   ;;  %v946_v9 = vld [vmem:[#allocation5 + $0x44] ss:$8 sps:$4 sm:$0xff]   ;;  %v948_v12 = vld [vmem:[#allocation5 + $0x40] ss:$8 sps:$4 sm:$0xff]  }
  0x6e   : > { %v958_v10 = vld [vmem:[#allocation7 + $0x40] sm:$0xff]   ;;  %v960_v13 = vld [vmem:[#allocation7 + $0x48] sm:$0xff]   ;;  %v949_v16 = vld [vmem:[#allocation5 + $0x54] ss:$8 sps:$4 sm:$0xff]   ;;  %v344_v35 = vshrl.u32 %v343_v34, 7  ;;  %s800_s29 = sshll.u32 %s1352_s15, 3 }
  0x6f   : > { %v959_v11 = vld [vmem:[#allocation7] sm:$0xff]   ;;  %840 = vmatprep.subr.bf16.mxu1 %v958_v10  ;;  %v961_v14 = vld [vmem:[#allocation7 + $0x8] sm:$0xff]   ;;  %v951_v17 = vld [vmem:[#allocation5 + $0x50] ss:$8 sps:$4 sm:$0xff]   ;;  %s837_s19 = sshll.u32 %s1204_s28, 7  ;;  %s322_s14 = scalar_lea.vmem [#allocation8], %s800_s29 }
  0x70   : > { %436 = vmatpush1.bf16.msra.mxu0 %v939_v4  ;;  %841 = vmatpush3.bf16.msra.mxu1 %v959_v11  ;;  %v963_v18 = vld [vmem:[#allocation7 + $0x10] sm:$0xff]   ;;  %v964_v19 = vld [vmem:[#allocation7 + $0x58] sm:$0xff]   ;;  %v952_v20 = vld [vmem:[#allocation5 + $0x64] ss:$8 sps:$4 sm:$0xff]   ;;  %v345_v36 = vsub.s32 0, %v344_v35  ;;  %v349_v38 = vsub.s32 1, %v344_v35  ;;  %s1384_s9 = scalar_lea.hbm %s1435_s7, %s837_s19 }
  0x71   : > { %437 = vmatprep.subr.bf16.mxu0 %v940_v5  ;;  %842 = vmatprep.subr.bf16.mxu1 %v960_v13  ;;  %v954_v21 = vld [vmem:[#allocation5 + $0x60] ss:$8 sps:$4 sm:$0xff]   ;;  %v955_v22 = vld [vmem:[#allocation5 + $0x74] ss:$8 sps:$4 sm:$0xff]   ;;  %v957_v26 = vld [vmem:[#allocation5 + $0x70] ss:$8 sps:$4 sm:$0xff]  }
  0x72   : > { %v965_v23 = vld [vmem:[#allocation7 + $0x18] sm:$0xff]   ;;  %v966_v24 = vld [vmem:[#allocation7 + $0x60] sm:$0xff]   ;;  %v968_v27 = vld [vmem:[#allocation7 + $0x68] sm:$0xff]   ;;  %s700_s20 = sshll.u32 %s322_s14, 4  ;;  %s687_s11 = scalar_lea.sflag [#allocation4], %s1352_s15  ;;  %s1386_s20 = int_to_ptr.vmem [resolvable:$true] %s700_s20 }
  0x73   : > { %v967_v25 = vld [vmem:[#allocation7 + $0x20] sm:$0xff]   ;;  %v969_v28 = vld [vmem:[#allocation7 + $0x28] sm:$0xff]   ;;  %v324_v29 = vld [vmem:[%s1356_s21] sm:$0xf]  ;;  %s1062_s23 = scalar_lea.vmem %s1386_s20, 128  ;;  %p1449_p0 = scmp.ne.s32.totalorder %s1444_s18, 0 }
  0x74   : > { %438 = vmatpush1.bf16.msra.mxu0 %v942_v6  ;;  %843 = vmatpush3.bf16.msra.mxu1 %v961_v14  ;;  %v970_v30 = vld [vmem:[#allocation7 + $0x70] sm:$0xff]   ;;  %v972_v32 = vld [vmem:[#allocation7 + $0x78] sm:$0xff]   ;;  %v653_v54 = vunpack.c.l.bf16 %v324_v29  ;;  %p1063_p11 = scmp.ne.s32.totalorder %s1386_s20, %s1062_s23  ;;  %s1142_s28 = smov [#allocation8]  }
  0x75   : > { %439 = vmatprep.subr.bf16.mxu0 %v943_v7  ;;  %844 = vmatprep.subr.bf16.mxu1 %v962_v15  ;;  %v971_v31 = vld [vmem:[#allocation7 + $0x30] sm:$0xff]   ;;  %v973_v33 = vld [vmem:[#allocation7 + $0x38] sm:$0xff]   ;;  %s1066_s29 = sshll.u32 %s1142_s28, 4  ;;  %s1067_s29 = int_to_ptr.vmem [resolvable:$false] %s1066_s29 }
  0x76   : > { %v341_v37 = vld [vmem:[%s1430_s2] sm:$0x3]  ;;  %p1064_p1 = pnand %p1063_p11, %p1449_p0  ;;  %s1068_s10 = scalar_lea.vmem %s1067_s29, 256 }
  0x77   : > { %v346_v39 = vrot.slane %v341_v37, %v345_v36  ;;  %v350_v40 = vrot.slane %v341_v37, %v349_v38  ;;  %v817_v52 = vld [vmem:[%s1432_s4] ss:$0 sm:$0xff]  ;;  %p1069_p5 = scmp.lt.s32.totalorder %s1386_s20, %s1067_s29  ;;  %p1070_p9 = scmp.lt.s32.totalorder %s1068_s10, %s1062_s23 }
  0x78   : > { %440 = vmatpush1.bf16.msra.mxu0 %v945_v8  ;;  %845 = vmatpush3.bf16.msra.mxu1 %v963_v18  ;;  %v834_v7 = vld [vmem:[%s1433_s5] ss:$0 sm:$0xff]  ;;  %p1065_p3 = pneg %p1064_p1 }
  0x79   : > { %441 = vmatprep.subr.bf16.mxu0 %v946_v9  ;;  %846 = vmatprep.subr.bf16.mxu1 %v964_v19  ;;  %v835_v9 = vld [vmem:[%s1434_s6] ss:$0 sm:$0xff]  ;;  %p1071_p12 = por %p1070_p9, %p1069_p5 }
  0x7b   : > { %p1072_p2 = pnand %p1071_p12, %p1065_p3 }
  0x7c   : > { %442 = vmatpush1.bf16.msra.mxu0 %v948_v12  ;;  %847 = vmatpush3.bf16.msra.mxu1 %v965_v23 }
  0x7d   : > { %443 = vmatprep.subr.bf16.mxu0 %v949_v16  ;;  %848 = vmatprep.subr.bf16.mxu1 %v966_v24 }
  0x80   : > { %444 = vmatpush1.bf16.msra.mxu0 %v951_v17  ;;  %849 = vmatpush3.bf16.msra.mxu1 %v967_v25 }
  0x81   : > { %445 = vmatprep.subr.bf16.mxu0 %v952_v20  ;;  %850 = vmatprep.subr.bf16.mxu1 %v968_v27 }
  0x84   : > { %446 = vmatpush1.bf16.msra.mxu0 %v954_v21  ;;  %851 = vmatpush3.bf16.msra.mxu1 %v969_v28 }
  0x85   : > { %447 = vmatprep.subr.bf16.mxu0 %v955_v22  ;;  %852 = vmatprep.subr.bf16.mxu1 %v970_v30 }
  0x88   : > { %448 = vmatpush1.bf16.msra.mxu0 %v957_v26  ;;  %853 = vmatpush3.bf16.msra.mxu1 %v971_v31 }
  0x89   : > { %854 = vmatprep.subr.bf16.mxu1 %v972_v32 }
  0x8b   : > { %466 = vmatmul.mubr.bf16.vlgmr.msra.gmra.mrb[0].mxu0 %v324_v29 }
  0x8c   : > { %855 = vmatpush3.bf16.msra.mxu1 %v973_v33 }
 0x15e   : > { %v467_v41 = vpop.f32.mrb[0].mxu0 }
 0x15f   : > { %v468_v42 = vadd.f32 %v467_v41, %v346_v39  ;;  %v469_v43 = vpop.f32.mrb[1].mxu0 }
 0x160   : > { %v470_v44 = vadd.f32 %v469_v43, %v350_v40  ;;  %v471_v45 = vpop.f32.mrb[2].mxu0 }
 0x161   : > { %v474_v46 = vmax.f32 %v468_v42, 0.0  ;;  %v472_v47 = vpop.f32.mrb[3].mxu0 }
 0x162   : > { %v475_v48 = vmax.f32 %v470_v44, 0.0 }
 0x163   : > { %v476_v50 = vpack.c.bf16 %v474_v46, %v474_v46 }
 0x164   : > { %v477_v49 = vpack.c.bf16 %v475_v48, %v475_v48 }
 0x166   : > { %645 = vmatprep.mubr.bf16.mxu1 %v477_v49 }
 0x167   : > { %646 = vmatmul.mubr.bf16.vlgmr.msra.gmra.mrb[0].mxu1 %v476_v50 }
 0x23a   : > { %v856_v51 = vpop.f32.mrb[0].mxu1 }
 0x23b   : > { %v857_v53 = vpop.f32.mrb[1].mxu1 }
 0x23c   : > { %v858_v55 = vadd.f32 %v857_v53, %v856_v51  ;;  %v859_v56 = vpop.f32.mrb[2].mxu1 }
 0x23d   : > { %v860_v57 = vpop.f32.mrb[3].mxu1 }
 0x23e   : > { %v648_v58 = vadd.f32 %v858_v55, %v817_v52 }
 0x240   : > { %v654_v59 = vadd.f32 %v653_v54, %v648_v58 }
 0x242   : > { %657 = vadd.xlane.f32.xlu0 %v654_v59  ;;  %v660_v60 = vmul.f32 %v654_v59, %v654_v59 }
 0x246   : > { %661 = vadd.xlane.f32.xlu0 %v660_v60 }
 0x2cf   : > { %v658_v61 = vpop.xlane.xlu0 %657 }
 0x2d0   : > { %v659_v62 = vmul.f32 0.0078125, %v658_v61 }
 0x2d2   : > { %v664_v0 = vmul.f32 %v659_v62, %v659_v62  ;;  %v667_v5 = vsub.f32 %v654_v59, %v659_v62 }
 0x2d3   : > { %v662_v63 = vpop.xlane.xlu0 %661 }
 0x2d4   : > { %v663_v1 = vmul.f32 0.0078125, %v662_v63 }
 0x2d6   : > { %v665_v2 = vsub.f32 %v663_v1, %v664_v0 }
 0x2d8   : > { %v666_v3 = vmax.f32 %v665_v2, 0.0 }
 0x2da   : > { %v668_v4 = vadd.f32 1e-05, %v666_v3 }
 0x2dc   : > { %974 = vrsqrt.f32 %v668_v4 }
 0x2e6   : > { %v975_v6 = vpop.eup %974 }
 0x2e7   : > { %v670_v8 = vmul.f32 %v975_v6, %v667_v5 }
 0x2e9   : > { %v677_v10 = vmul.f32 %v834_v7, %v670_v8 }
 0x2eb   : > { %v684_v11 = vadd.f32 %v835_v9, %v677_v10 }
 0x2ed   : > { %685 = vst [vmem:[%s322_s14] sm:$0xff] %v684_v11 }
 0x2ee   : > { %1075 = shalt.err (!%p1072_p2)
}
 0x2ef   : > { %s1076_s15 = scalar_lea.hbm %s1384_s9, 128  ;;  %s1080_s16 = scalar_lea.hbm %s1435_s7, 256 }
 0x2f0   : > { %p1077_p13 = scmp.ne.s32.totalorder %s1384_s9, %s1076_s15  ;;  %p1081_p4 = scmp.lt.u32.totalorder %s1384_s9, %s1435_s7 }
 0x2f1   : > { %p1082_p7 = scmp.lt.u32.totalorder %s1080_s16, %s1076_s15  ;;  %p1084_p11 = scmp.lt.u32.totalorder %s1076_s15, %s1384_s9 }
 0x2f2   : > { %p1078_p6 = pnand %p1077_p13, %p1449_p0 }
 0x2f3   : > { %p1083_p8 = por %p1082_p7, %p1081_p4 }
 0x2f4   : > { %p1079_p10 = pneg %p1078_p6 }
 0x2f5   : > { %p1085_p1 = por %p1084_p11, %p1083_p8 }
 0x2f7   : > { %p1086_p3 = pnand %p1085_p1, %p1079_p10 }
 0x2f9   : > { %1089 = shalt.err (!%p1086_p3)
}
 0x2fa   : > { %872 = dma.vmem_to_hbm [thread:$0]  (%p1449_p0), %s1386_s20, 128, %s1384_s9, %s687_s11  }
 0x2fb PF: > { %s712_s21 = sand.u32 1, %s1120_s24   ;;  %p1450_p5 = scmp.ne.s32.totalorder %s1440_s8, 0 }
 0x2fc   : > { %p1451_p9 = scmp.ge.s32.totalorder %s1132_s27, 2  ;;  %s713_s30 = scalar_lea.sflag [#allocation4], %s712_s21 }
 0x2fe   : > { %p886_p12 = pnand %p1451_p9, %p1450_p5 }
 0x300   : > { %1115 = dma.done.wait (!%p886_p12), %s713_s30, 128  }
 0x301   : > { %1117 = vsyncadd (!%p886_p12), %s713_s30, 4294967168  ;;  %p21_p2 = scmp.ge.s32.totalorder %s1293_s13, 4   ;;  %s1452_s24 = smov %s1124_s25 }
 0x302   : > { %s1453_s25 = smov %s1128_s26  ;;  %s1454_s26 = smov %s1302_s17 }
 0x303   : > { %s1455_s27 = smov %s1293_s13  ;;  %23 = sbr.rel (!%p21_p2) target bundleno = 6 (0x6), region = 101 }
 0x30a   :  { %718 = vsyncpa [#allocation3], 1 }
 0x30b   :  { %720 = vsyncpa [#allocation3 + $0x1], 1 }
 0x30c   :  { %721 = vsyncpa [#allocation6], 1 }
 0x30d   :  { %722 = vsyncpa [#allocation4], 1 }
 0x30e   :  { %724 = vsyncpa [#allocation4 + $0x1], 1 }

</bundles_post_ra>
